<compile_context>
chip_gen: v5e
topology: v5e:2x2
jax: 0.10.0
libtpu: 0.0.40
codegen_flags: <defaults>
</compile_context>

<pallas_src>
import functools

import numpy as np
import jax
import jax.numpy as jnp
from jax.experimental import pallas as pl
from jax.experimental.pallas import tpu as pltpu


# ---------------------------------------------------------------------------
# helpers
# ---------------------------------------------------------------------------
def _shuffle_src(channels, groups):
    """Static indices: out[:, n, ...] = in[:, src[n], ...] == channel_shuffle."""
    cpg = channels // groups
    n = np.arange(channels)
    src = (n % groups) * cpg + n // groups
    return tuple(int(v) for v in src)


def _scale_and_shuffle(x, s_full, src):
    """x: (TB, C, L) native dtype; s_full: (TB, C) f32 in pre-shuffle order.

    VPU broadcast multiply (scale cast to x.dtype, never the big tile) and a
    static channel permutation via C static sublane slices + one concatenate
    (XLU work only — no MXU, no (TB, C, C) temporary).
    """
    scaled = x * s_full.astype(x.dtype)[:, :, None]
    return jnp.concatenate([scaled[:, j:j + 1, :] for j in src], axis=1)


def _banded_conv_matrix(conv_w, c_half, k_size):
    """(C2, C2) matrix M such that (avg @ M)[:, i] == Conv1d(1,1,k,pad)(avg)[:, i]."""
    pad = (k_size - 1) // 2
    i_idx = jnp.arange(c_half)[:, None]      # output channel
    m_idx = jnp.arange(c_half)[None, :]      # input channel
    tap = m_idx - i_idx + pad
    wk = conv_w.astype(jnp.float32)
    band = jnp.where((tap >= 0) & (tap < k_size),
                     wk[jnp.clip(tap, 0, k_size - 1)], 0.0)   # (C2_out, C2_in)
    return band.T                                              # avg @ M == conv


def _choose_tb(batch, bytes_per_batch, target_block_bytes):
    """Batch-tile size: big blocks (amortize per-step overhead) but enough
    parallel grid steps for megacore / 2-TensorCore sharding."""
    cap = max(1, target_block_bytes // bytes_per_batch)
    tb = max(1, min(batch, cap))
    # Prefer ~8 parallel steps while blocks stay >= 256 KiB.
    while tb > 1 and -(-batch // tb) < 8 and (tb // 2) * bytes_per_batch >= (256 << 10):
        tb //= 2
    # Always give the grid >= 2 parallel steps when the batch allows it.
    if tb >= batch and batch >= 2:
        tb = -(-batch // 2)
    return tb


# ---------------------------------------------------------------------------
# fused single-pass kernel (tile = (TB, C, HW) fits comfortably in VMEM)
# ---------------------------------------------------------------------------
def lga_fused_kernel(x_ref, conv_mat_ref, conv_b_ref, w1t_ref, w2t_ref, o_ref,
                     *, channels, src):
    C = channels
    C2 = C // 2
    TB = x_ref.shape[0]

    x = x_ref[...]                                            # (TB, C, HW), native dtype

    # ---- pooled statistics: one pass of lane reductions over the tile ----
    mean_full = jnp.mean(x, axis=-1, dtype=jnp.float32)       # (TB, C)
    max_full = jnp.max(x, axis=-1).astype(jnp.float32)        # (TB, C)

    # ---- branch 1 (ECA on first half): banded conv over channels + sigmoid ----
    avg1 = mean_full[:, :C2]                                  # (TB, C2)
    conv = jnp.dot(avg1, conv_mat_ref[...],
                   preferred_element_type=jnp.float32) + conv_b_ref[0]
    s1 = jax.nn.sigmoid(conv)                                 # (TB, C2)

    # ---- branch 2 (CBAM on second half): shared MLP on max & avg pools ----
    pooled = jnp.concatenate([max_full[:, C2:], mean_full[:, C2:]], axis=0)
    hidden = jnp.maximum(
        jnp.dot(pooled, w1t_ref[...], preferred_element_type=jnp.float32), 0.0)
    mlp_out = jnp.dot(hidden, w2t_ref[...], preferred_element_type=jnp.float32)
    s2 = jax.nn.sigmoid(mlp_out[:TB] + mlp_out[TB:])          # (TB, C2)

    s_full = jnp.concatenate([s1, s2], axis=1)                # (TB, C) f32

    # ---- VPU rescale + static channel shuffle, stored in native dtype ----
    o_ref[...] = _scale_and_shuffle(x, s_full, src).astype(o_ref.dtype)


# ---------------------------------------------------------------------------
# two-pass spatially-tiled path (per-batch C*HW too big for a single tile)
# ---------------------------------------------------------------------------
def lga_pool_kernel(x_ref, mean_ref, max_ref, sum_acc, max_acc, *, hw_total):
    hw_i = pl.program_id(1)
    n_hw = pl.num_programs(1)
    thw = x_ref.shape[2]

    x = x_ref[...].astype(jnp.float32)                        # (TB, C, THW)
    # Mask lanes past the true HW extent (ragged last tile).
    lane = jax.lax.broadcasted_iota(jnp.int32, x.shape, 2) + hw_i * thw
    valid = lane < hw_total
    xs = jnp.where(valid, x, 0.0)
    xm = jnp.where(valid, x, -jnp.inf)

    @pl.when(hw_i == 0)
    def _():
        sum_acc[...] = jnp.zeros_like(sum_acc)
        max_acc[...] = jnp.full_like(max_acc, -jnp.inf)

    sum_acc[...] += jnp.sum(xs, axis=-1)                      # (TB, C)
    max_acc[...] = jnp.maximum(max_acc[...], jnp.max(xm, axis=-1))

    @pl.when(hw_i == n_hw - 1)
    def _():
        mean_ref[...] = (sum_acc[...] / float(hw_total))[:, None, :]
        max_ref[...] = max_acc[...][:, None, :]


def lga_rescale_kernel(x_ref, s_ref, o_ref, *, src):
    x = x_ref[...]                                            # (TB, C, THW)
    s = s_ref[...][:, 0, :]                                   # (TB, C) f32
    o_ref[...] = _scale_and_shuffle(x, s, src).astype(o_ref.dtype)


# ---------------------------------------------------------------------------
# wrapper
# ---------------------------------------------------------------------------
def lga_forward(x, conv_w, conv_b, w1, w2, *, k_size, groups,
                target_block_bytes=2 << 20,
                fused_block_limit_bytes=4 << 20):
    B, C, H, W = x.shape
    HW = H * W
    C2 = C // 2
    Cred = w1.shape[0]
    itemsize = x.dtype.itemsize
    src = _shuffle_src(C, groups)

    # Activations stay in their native dtype end-to-end (bf16 halves HBM traffic).
    # TODO(synk): for bf16/int8 with C below the sublane tile (16/32), fold
    # batch into the sublane axis ((B*C, HW) layout) to keep vregs dense.
    x_flat = x.reshape(B, C, HW)

    conv_mat = _banded_conv_matrix(conv_w, C2, k_size)        # (C2, C2) f32
    conv_b_f32 = conv_b.astype(jnp.float32)
    w1t = jnp.transpose(w1).astype(jnp.float32)               # (C2, Cred)
    w2t = jnp.transpose(w2).astype(jnp.float32)               # (Cred, C2)

    bytes_per_batch = C * HW * itemsize

    # ---------------- fused single-pass path ----------------
    if bytes_per_batch <= max(fused_block_limit_bytes, 1):
        TB = _choose_tb(B, bytes_per_batch, target_block_bytes)
        nb = pl.cdiv(B, TB)
        block_bytes = TB * bytes_per_batch
        est = 8 * block_bytes + (4 << 20)
        vmem_limit = int(min(56 << 20, max(32 << 20, est)))

        kernel = functools.partial(lga_fused_kernel, channels=C, src=src)
        out = pl.pallas_call(
            kernel,
            out_shape=jax.ShapeDtypeStruct((B, C, HW), x.dtype),
            grid=(nb,),
            in_specs=[
                pl.BlockSpec((TB, C, HW), lambda b: (b, 0, 0)),        # activations
                pl.BlockSpec((C2, C2), lambda b: (0, 0)),              # banded conv matrix
                pl.BlockSpec(memory_space=pltpu.MemorySpace.SMEM),     # conv bias (1,)
                pl.BlockSpec((C2, Cred), lambda b: (0, 0)),            # W1^T
                pl.BlockSpec((Cred, C2), lambda b: (0, 0)),            # W2^T
            ],
            out_specs=pl.BlockSpec((TB, C, HW), lambda b: (b, 0, 0)),
            compiler_params=pltpu.CompilerParams(
                dimension_semantics=("parallel",),
                vmem_limit_bytes=vmem_limit),
            cost_estimate=pl.CostEstimate(
                flops=int(3 * B * C * HW),
                transcendentals=int(B * C),
                bytes_accessed=int(2 * B * C * HW * itemsize)),
        )(x_flat, conv_mat, conv_b_f32, w1t, w2t)
        return out.reshape(B, C, H, W)

    # ------------- spatially (HW) tiled two-pass path -------------
    # Needed when a single batch element's (C, HW) slab would blow VMEM
    # (e.g. large images on v7x's 64 MiB VMEM / 32 MiB scoped default).
    thw = max(128, (target_block_bytes // max(1, C * itemsize)) // 128 * 128)
    thw = min(thw, HW)
    n_hw = pl.cdiv(HW, thw)
    block_bytes = C * thw * itemsize
    vmem_limit = int(min(56 << 20, max(32 << 20, 8 * block_bytes + (4 << 20))))

    # Pass 1: pooled mean / max per (batch, channel), accumulated over HW tiles.
    pool_kernel = functools.partial(lga_pool_kernel, hw_total=HW)
    mean_p, max_p = pl.pallas_call(
        pool_kernel,
        out_shape=(jax.ShapeDtypeStruct((B, 1, C), jnp.float32),
                   jax.ShapeDtypeStruct((B, 1, C), jnp.float32)),
        grid=(B, n_hw),
        in_specs=[pl.BlockSpec((1, C, thw), lambda b, h: (b, 0, h))],
        out_specs=(pl.BlockSpec((1, 1, C), lambda b, h: (b, 0, 0)),
                   pl.BlockSpec((1, 1, C), lambda b, h: (b, 0, 0))),
        scratch_shapes=[pltpu.VMEM((1, C), jnp.float32),
                        pltpu.VMEM((1, C), jnp.float32)],
        compiler_params=pltpu.CompilerParams(
            dimension_semantics=("parallel", "arbitrary"),
            vmem_limit_bytes=vmem_limit),
        cost_estimate=pl.CostEstimate(
            flops=int(2 * B * C * HW),
            transcendentals=0,
            bytes_accessed=int(B * C * HW * itemsize)),
    )(x_flat)

    # Tiny (B, C) scale math in plain JAX (negligible vs. the HBM passes).
    mean_full = mean_p[:, 0, :]
    max_full = max_p[:, 0, :]
    s1 = jax.nn.sigmoid(mean_full[:, :C2] @ conv_mat + conv_b_f32[0])

    def _mlp(p):
        return jnp.maximum(p @ w1t, 0.0) @ w2t

    s2 = jax.nn.sigmoid(_mlp(max_full[:, C2:]) + _mlp(mean_full[:, C2:]))
    s_full = jnp.concatenate([s1, s2], axis=1)[:, None, :]    # (B, 1, C) f32

    # Pass 2: elementwise rescale + static channel shuffle over HW tiles.
    rescale_kernel = functools.partial(lga_rescale_kernel, src=src)
    out = pl.pallas_call(
        rescale_kernel,
        out_shape=jax.ShapeDtypeStruct((B, C, HW), x.dtype),
        grid=(B, n_hw),
        in_specs=[pl.BlockSpec((1, C, thw), lambda b, h: (b, 0, h)),
                  pl.BlockSpec((1, 1, C), lambda b, h: (b, 0, 0))],
        out_specs=pl.BlockSpec((1, C, thw), lambda b, h: (b, 0, h)),
        compiler_params=pltpu.CompilerParams(
            dimension_semantics=("parallel", "parallel"),
            vmem_limit_bytes=vmem_limit),
        cost_estimate=pl.CostEstimate(
            flops=int(B * C * HW),
            transcendentals=0,
            bytes_accessed=int(2 * B * C * HW * itemsize)),
    )(x_flat, s_full)
    return out.reshape(B, C, H, W)


# ---------------------------------------------------------------------------
# pure-JAX reference (matches the PyTorch forward exactly)
# ---------------------------------------------------------------------------
def lga_reference(x, conv_w, conv_b, w1, w2, *, groups):
    B, C, H, W = x.shape
    C2 = C // 2
    x1, x2 = x[:, :C2], x[:, C2:]

    k = conv_w.shape[0]
    pad = (k - 1) // 2
    avg1 = jnp.mean(x1, axis=(2, 3))                           # (B, C2)
    padded = jnp.pad(avg1, ((0, 0), (pad, pad)))
    conv = sum(conv_w[j] * padded[:, j:j + C2] for j in range(k)) + conv_b[0]
    s1 = jax.nn.sigmoid(conv)
    x1s = x1 * s1[:, :, None, None]

    maxp = jnp.max(x2, axis=(2, 3))
    avgp = jnp.mean(x2, axis=(2, 3))

    def mlp(p):
        return jnp.maximum(p @ w1.T, 0.0) @ w2.T

    s2 = jax.nn.sigmoid(mlp(maxp) + mlp(avgp))
    x2s = x2 * s2[:, :, None, None]

    cat = jnp.concatenate([x1s, x2s], axis=1)
    out = cat.reshape(B, groups, C // groups, H, W)
    out = jnp.transpose(out, (0, 2, 1, 3, 4)).reshape(B, C, H, W)
    return out


if __name__ == "__main__":
    k_size, reduction, groups = 3, 4, 2
    key = jax.random.PRNGKey(0)
    kx, kx2, kw, kb, k1, k2 = jax.random.split(key, 6)

    # ---- test 1: small shapes, single fused-kernel path ----
    B, C, H, W = 2, 8, 16, 16
    C2, Cred = C // 2, C // reduction
    x = jax.random.normal(kx, (B, C, H, W), jnp.float32)
    conv_w = 0.5 * jax.random.normal(kw, (k_size,), jnp.float32)   # Conv1d(1,1,k) weight
    conv_b = 0.1 * jax.random.normal(kb, (1,), jnp.float32)        # Conv1d bias
    w1 = 0.5 * jax.random.normal(k1, (Cred, C2), jnp.float32)      # Conv2d(C/2 -> C/r, 1)
    w2 = 0.5 * jax.random.normal(k2, (C2, Cred), jnp.float32)      # Conv2d(C/r -> C/2, 1)

    out = jax.block_until_ready(
        lga_forward(x, conv_w, conv_b, w1, w2, k_size=k_size, groups=groups))
    ref = lga_reference(x, conv_w, conv_b, w1, w2, groups=groups)
    assert out.shape == (B, C, H, W)
    assert jnp.allclose(out, ref, rtol=1e-5, atol=3e-4), (
        f"fused path: max abs diff = {jnp.max(jnp.abs(out - ref))}")

    # ---- test 2: force the spatially tiled two-pass path (ragged HW tail) ----
    H2 = W2 = 17                       # HW = 289: exercises the masked tail tile
    x2 = jax.random.normal(kx2, (B, C, H2, W2), jnp.float32)
    out2 = jax.block_until_ready(
        lga_forward(x2, conv_w, conv_b, w1, w2, k_size=k_size, groups=groups,
                    target_block_bytes=4096, fused_block_limit_bytes=0))
    ref2 = lga_reference(x2, conv_w, conv_b, w1, w2, groups=groups)
    assert out2.shape == (B, C, H2, W2)
    assert jnp.allclose(out2, ref2, rtol=1e-5, atol=3e-4), (
        f"tiled path: max abs diff = {jnp.max(jnp.abs(out2 - ref2))}")

    print("KERNEL_OK")
</pallas_src>

<mosaic_0001>
module attributes {stable_mosaic.version = 11 : i64} {
  func.func @lga_fused_kernel(%arg0: i32, %arg1: memref<1x8x256xf32, #tpu.memory_space<vmem>>, %arg2: memref<4x4xf32, #tpu.memory_space<vmem>>, %arg3: memref<1xf32, #tpu.memory_space<smem>>, %arg4: memref<4x2xf32, #tpu.memory_space<vmem>>, %arg5: memref<2x4xf32, #tpu.memory_space<vmem>>, %arg6: memref<1x8x256xf32, #tpu.memory_space<vmem>>) attributes {dimension_semantics = [#tpu.dimension_semantics<parallel>], iteration_bounds = array<i64: 2>, scalar_prefetch = 0 : i64, scratch_operands = 0 : i64, tpu.core_type = #tpu.core_type<tc>, window_params = [{transform_indices = @transform_0, window_bounds = array<i64: 1, 8, 256>}, {pipeline_mode = #tpu.pipeline_mode<synchronous>, transform_indices = @transform_1, window_bounds = array<i64: 4, 4>}, {transform_indices = @transform_2, window_bounds = array<i64: 1>}, {pipeline_mode = #tpu.pipeline_mode<synchronous>, transform_indices = @transform_3, window_bounds = array<i64: 4, 2>}, {pipeline_mode = #tpu.pipeline_mode<synchronous>, transform_indices = @transform_4, window_bounds = array<i64: 2, 4>}, {transform_indices = @transform_5, window_bounds = array<i64: 1, 8, 256>}]} {
    %c0 = arith.constant 0 : index
    %c0_0 = arith.constant 0 : index
    %c0_1 = arith.constant 0 : index
    %0 = vector.load %arg1[%c0, %c0_0, %c0_1] : memref<1x8x256xf32, #tpu.memory_space<vmem>>, vector<1x8x256xf32>
    %cst = arith.constant dense<0.000000e+00> : vector<1x8xf32>
    %1 = vector.multi_reduction <add>, %0, %cst [2] : vector<1x8x256xf32> to vector<1x8xf32>
    %cst_2 = arith.constant 2.560000e+02 : f32
    %2 = vector.broadcast %cst_2 : f32 to vector<1x8xf32>
    %3 = arith.divf %1, %2 : vector<1x8xf32>
    %cst_3 = arith.constant dense<0xFF800000> : vector<1x8xf32>
    %4 = vector.multi_reduction <maximumf>, %0, %cst_3 [2] : vector<1x8x256xf32> to vector<1x8xf32>
    %5 = vector.extract_strided_slice %3 {offsets = [0, 0], sizes = [1, 4], strides = [1, 1]} : vector<1x8xf32> to vector<1x4xf32>
    %c0_4 = arith.constant 0 : index
    %c0_5 = arith.constant 0 : index
    %6 = vector.load %arg2[%c0_4, %c0_5] : memref<4x4xf32, #tpu.memory_space<vmem>>, vector<4x4xf32>
    %cst_6 = arith.constant dense<0.000000e+00> : vector<1x4xf32>
    %7 = tpu.matmul %5, %6, %cst_6 {dimension_numbers = #tpu.dot_dimension_numbers<[1], [0], [0], [1], [0, 0, 1, 1], [], []>} : vector<1x4xf32>, vector<4x4xf32>, vector<1x4xf32> -> vector<1x4xf32>
    %c0_7 = arith.constant 0 : index
    %8 = memref.load %arg3[%c0_7] : memref<1xf32, #tpu.memory_space<smem>>
    %9 = vector.broadcast %8 : f32 to vector<1x4xf32>
    %10 = arith.addf %7, %9 : vector<1x4xf32>
    %11 = arith.negf %10 : vector<1x4xf32>
    %12 = math.exp %11 : vector<1x4xf32>
    %cst_8 = arith.constant 1.000000e+00 : f32
    %13 = vector.broadcast %cst_8 : f32 to vector<1x4xf32>
    %14 = arith.addf %13, %12 : vector<1x4xf32>
    %15 = arith.divf %13, %14 : vector<1x4xf32>
    %16 = vector.extract_strided_slice %4 {offsets = [0, 4], sizes = [1, 4], strides = [1, 1]} : vector<1x8xf32> to vector<1x4xf32>
    %17 = vector.extract_strided_slice %3 {offsets = [0, 4], sizes = [1, 4], strides = [1, 1]} : vector<1x8xf32> to vector<1x4xf32>
    %18 = tpu.concatenate %16, %17 in 0 : vector<1x4xf32>, vector<1x4xf32> -> vector<2x4xf32>
    %c0_9 = arith.constant 0 : index
    %c0_10 = arith.constant 0 : index
    %19 = vector.load %arg4[%c0_9, %c0_10] : memref<4x2xf32, #tpu.memory_space<vmem>>, vector<4x2xf32>
    %cst_11 = arith.constant dense<0.000000e+00> : vector<2x2xf32>
    %20 = tpu.matmul %18, %19, %cst_11 {dimension_numbers = #tpu.dot_dimension_numbers<[1], [0], [0], [1], [0, 0, 1, 1], [], []>} : vector<2x4xf32>, vector<4x2xf32>, vector<2x2xf32> -> vector<2x2xf32>
    %cst_12 = arith.constant 0.000000e+00 : f32
    %21 = vector.broadcast %cst_12 : f32 to vector<2x2xf32>
    %22 = arith.maximumf %20, %21 : vector<2x2xf32>
    %c0_13 = arith.constant 0 : index
    %c0_14 = arith.constant 0 : index
    %23 = vector.load %arg5[%c0_13, %c0_14] : memref<2x4xf32, #tpu.memory_space<vmem>>, vector<2x4xf32>
    %cst_15 = arith.constant dense<0.000000e+00> : vector<2x4xf32>
    %24 = tpu.matmul %22, %23, %cst_15 {dimension_numbers = #tpu.dot_dimension_numbers<[1], [0], [0], [1], [0, 0, 1, 1], [], []>} : vector<2x2xf32>, vector<2x4xf32>, vector<2x4xf32> -> vector<2x4xf32>
    %25 = vector.extract_strided_slice %24 {offsets = [0, 0], sizes = [1, 4], strides = [1, 1]} : vector<2x4xf32> to vector<1x4xf32>
    %26 = vector.extract_strided_slice %24 {offsets = [1, 0], sizes = [1, 4], strides = [1, 1]} : vector<2x4xf32> to vector<1x4xf32>
    %27 = arith.addf %25, %26 : vector<1x4xf32>
    %28 = arith.negf %27 : vector<1x4xf32>
    %29 = math.exp %28 : vector<1x4xf32>
    %cst_16 = arith.constant 1.000000e+00 : f32
    %30 = vector.broadcast %cst_16 : f32 to vector<1x4xf32>
    %31 = arith.addf %30, %29 : vector<1x4xf32>
    %32 = arith.divf %30, %31 : vector<1x4xf32>
    %33 = tpu.concatenate %15, %32 in 1 : vector<1x4xf32>, vector<1x4xf32> -> vector<1x8xf32>
    %34 = vector.shape_cast %33 : vector<1x8xf32> to vector<1x8x1xf32>
    %35 = vector.broadcast %34 : vector<1x8x1xf32> to vector<1x8x256xf32>
    %36 = arith.mulf %0, %35 : vector<1x8x256xf32>
    %37 = vector.extract_strided_slice %36 {offsets = [0, 0, 0], sizes = [1, 1, 256], strides = [1, 1, 1]} : vector<1x8x256xf32> to vector<1x1x256xf32>
    %38 = vector.extract_strided_slice %36 {offsets = [0, 4, 0], sizes = [1, 1, 256], strides = [1, 1, 1]} : vector<1x8x256xf32> to vector<1x1x256xf32>
    %39 = vector.extract_strided_slice %36 {offsets = [0, 1, 0], sizes = [1, 1, 256], strides = [1, 1, 1]} : vector<1x8x256xf32> to vector<1x1x256xf32>
    %40 = vector.extract_strided_slice %36 {offsets = [0, 5, 0], sizes = [1, 1, 256], strides = [1, 1, 1]} : vector<1x8x256xf32> to vector<1x1x256xf32>
    %41 = vector.extract_strided_slice %36 {offsets = [0, 2, 0], sizes = [1, 1, 256], strides = [1, 1, 1]} : vector<1x8x256xf32> to vector<1x1x256xf32>
    %42 = vector.extract_strided_slice %36 {offsets = [0, 6, 0], sizes = [1, 1, 256], strides = [1, 1, 1]} : vector<1x8x256xf32> to vector<1x1x256xf32>
    %43 = vector.extract_strided_slice %36 {offsets = [0, 3, 0], sizes = [1, 1, 256], strides = [1, 1, 1]} : vector<1x8x256xf32> to vector<1x1x256xf32>
    %44 = vector.extract_strided_slice %36 {offsets = [0, 7, 0], sizes = [1, 1, 256], strides = [1, 1, 1]} : vector<1x8x256xf32> to vector<1x1x256xf32>
    %45 = tpu.concatenate %37, %38, %39, %40, %41, %42, %43, %44 in 1 : vector<1x1x256xf32>, vector<1x1x256xf32>, vector<1x1x256xf32>, vector<1x1x256xf32>, vector<1x1x256xf32>, vector<1x1x256xf32>, vector<1x1x256xf32>, vector<1x1x256xf32> -> vector<1x8x256xf32>
    %c0_17 = arith.constant 0 : index
    %c0_18 = arith.constant 0 : index
    %c0_19 = arith.constant 0 : index
    %46 = vector.load %arg6[%c0_17, %c0_18, %c0_19] : memref<1x8x256xf32, #tpu.memory_space<vmem>>, vector<1x8x256xf32>
    tpu.vector_store %arg6[%c0_17, %c0_18, %c0_19], %45 {strides = array<i32>} : memref<1x8x256xf32, #tpu.memory_space<vmem>>, vector<1x8x256xf32>,
    return
  }
  func.func @transform_0(%arg0: i32) -> (i32, i32, i32) {
    %c0_i32 = arith.constant 0 : i32
    %c0_i32_0 = arith.constant 0 : i32
    %c0_i32_1 = arith.constant 0 : i32
    return %arg0, %c0_i32, %c0_i32_0 : i32, i32, i32
  }
  func.func @transform_1(%arg0: i32) -> (i32, i32) {
    %c0_i32 = arith.constant 0 : i32
    %c0_i32_0 = arith.constant 0 : i32
    %c0_i32_1 = arith.constant 0 : i32
    return %c0_i32, %c0_i32_0 : i32, i32
  }
  func.func @transform_2(%arg0: i32) -> i32 {
    %c0_i32 = arith.constant 0 : i32
    %c0_i32_0 = arith.constant 0 : i32
    return %c0_i32 : i32
  }
  func.func @transform_3(%arg0: i32) -> (i32, i32) {
    %c0_i32 = arith.constant 0 : i32
    %c0_i32_0 = arith.constant 0 : i32
    %c0_i32_1 = arith.constant 0 : i32
    return %c0_i32, %c0_i32_0 : i32, i32
  }
  func.func @transform_4(%arg0: i32) -> (i32, i32) {
    %c0_i32 = arith.constant 0 : i32
    %c0_i32_0 = arith.constant 0 : i32
    %c0_i32_1 = arith.constant 0 : i32
    return %c0_i32, %c0_i32_0 : i32, i32
  }
  func.func @transform_5(%arg0: i32) -> (i32, i32, i32) {
    %c0_i32 = arith.constant 0 : i32
    %c0_i32_0 = arith.constant 0 : i32
    %c0_i32_1 = arith.constant 0 : i32
    return %arg0, %c0_i32, %c0_i32_0 : i32, i32, i32
  }
}

</mosaic_0001>

<bundles_post_ra>
// kernel: tpu_custom_call.1
= control target key start
LH: loop header
LB: loop body
LE: loop exit
PB: predicated region body
PF: predicated region fallthrough
CT: control target
= control target key end

     0   :  { %s936_s0 = inlined_call_operand.hbm [shape: f32[2,8,256], index: 0, kind: input, shape index: {}]   ;;  %s937_s1 = inlined_call_operand.vmem [shape: f32[4,4], index: 1, kind: input, shape index: {}]   ;;  %s938_s2 = inlined_call_operand.<no memory space> [shape: f32[1], index: 2, kind: input, shape index: {}]   ;;  %s939_s3 = inlined_call_operand.vmem [shape: f32[4,2], index: 3, kind: input, shape index: {}]   ;;  %s940_s4 = inlined_call_operand.vmem [shape: f32[2,4], index: 4, kind: input, shape index: {}]   ;;  %s941_s5 = inlined_call_operand.hbm [shape: f32[2,8,256], index: 5, kind: output, shape index: {}]  }
   0x1   :  { %10 = sst [smem:[#allocation2]] %s938_s2 }
   0x2   :  { %11 = vsyncpa [#allocation4], 0 }
   0x3   :  { %13 = vsyncpa [#allocation4 + $0x1], 0 }
   0x4   :  { %14 = vsyncpa [#allocation5], 0 }
   0x5   :  { %16 = vsyncpa [#allocation5 + $0x1], 0  ;;  %s765_s20 = smov 0   ;;  %s767_s21 = smov 0  }
   0x6   :  { %s769_s22 = smov 0   ;;  %s771_s23 = smov 0  }
   0x7 LB: > { %s786_s2 = sadd.s32 4294967295, %s728_s23   ;;  %s548_s24 = sadd.s32 4294967294, %s728_s23   ;;  %s728_s23 = sphi %s771_s23, %s951_s23   ;;  %s724_s22 = sphi %s769_s22, %s950_s22   ;;  %s720_s21 = sphi %s767_s21, %s949_s21   ;;  %s716_s20 = sphi %s765_s20, %s948_s20  }
   0x8   : > { %s790_s25 = sadd.s32 1, %s728_s23   ;;  %s29_s26 = sadd.s32 1, %s724_s22 }
   0x9   : > { %s26_s27 = ssub.s32 %s728_s23, %s790_s25  ;;  %p36_p0 = scmp.ne.s32.totalorder %s724_s22, %s720_s21 }
   0xa   : > { %p27_p1 = scmp.eq.s32.totalorder %s26_s27, 0  ;;  %p37_p2 = scmp.eq.s32.totalorder %s728_s23, 0 }
   0xb   : > { %p42_p3 = scmp.ne.s32.totalorder %s720_s21, %s716_s20  ;;  %p43_p4 = scmp.eq.s32.totalorder %s786_s2, 0 }
   0xc   : > { %s802_s28 = scalar_select %p27_p1, %s724_s22, %s29_s26  }
   0xd   : > { %p804_p5 = por %p37_p2, %p36_p0  ;;  %p808_p6 = por %p43_p4, %p42_p3 }
   0xe   : > { %p150_p7 = scmp.eq.s32.totalorder %s786_s2, 1  ;;  %p156_p8 = scmp.eq.s32.totalorder %s548_s24, 1 }
   0xf   : > { %p584_p10 = scmp.lt.s32.totalorder %s728_s23, 2  ;;  %s188_s8 = sand.u32 1, %s724_s22  }
  0x10   : > { %p815_p11 = por %p150_p7, %p36_p0  ;;  %p819_p12 = por %p156_p8, %p42_p3 }
  0x11   : > { %s570_s9 = sshll.u32 %s728_s23, 4  ;;  %s551_s10 = sshll.u32 %s188_s8, 4 }
  0x12   : > { %s197_s13 = scalar_lea.hbm %s936_s0, %s570_s9  ;;  %s192_s15 = scalar_lea.vmem [#allocation3], %s551_s10 }
  0x13   : > { %s199_s14 = sshll.u32 %s197_s13, 4  ;;  %s201_s16 = sshll.u32 %s192_s15, 4  ;;  %s200_s14 = int_to_ptr.hbm [resolvable:$true] %s199_s14  ;;  %s202_s16 = int_to_ptr.vmem [resolvable:$true] %s201_s16 }
  0x14   : > { %p830_p13 = pnand %p584_p10, %p804_p5  ;;  %p554_p0 = scmp.ge.s32.totalorder %s728_s23, 1 }
  0x15   : > { %p206_p1 = scmp.lt.s32.totalorder %s728_s23, 3  ;;  %s189_s18 = scalar_lea.sflag [#allocation4], %s188_s8 }
  0x16   : > { %s632_s19 = sshra.s32 %s200_s14, 4  ;;  %p636_p3 = pneg %p830_p13  ;;  %s633_s19 = int_to_ptr.hbm [resolvable:$true] %s632_s19 }
  0x17   : > { %s634_s24 = scalar_lea.hbm %s633_s19, 16  ;;  %s639_s29 = scalar_lea.hbm %s936_s0, 32 }
  0x18   : > { %p635_p2 = scmp.ne.s32.totalorder %s633_s19, %s634_s24  ;;  %p640_p5 = scmp.lt.s32.totalorder %s633_s19, %s936_s0 }
  0x19   : > { %p641_p8 = scmp.lt.s32.totalorder %s639_s29, %s634_s24 }
  0x1a   : > { %p637_p4 = pnand %p636_p3, %p635_p2 }
  0x1b   : > { %p642_p10 = por %p641_p8, %p640_p5 }
  0x1c   : > { %p638_p7 = pneg %p637_p4 }
  0x1e   : > { %p643_p9 = pnand %p642_p10, %p638_p7 }
  0x20   : > { %646 = shalt.err (!%p643_p9)
}
  0x21   : > { %579 = dma.hbm_to_vmem [thread:$0]  (!%p830_p13), %s200_s14, 256, %s202_s16, %s189_s18  }
  0x22   : > { %p207_p2 = pnand %p554_p0, %p206_p1 }
  0x23   : > { %s851_s8 = sand.u32 (!%p207_p2), 1, %s720_s21  }
  0x24   : > { %210 = sbr.rel (%p207_p2) target bundleno = 712 (0x2c8), region = 40  ;;  %s555_s11 = sshll.u32 (!%p207_p2), %s851_s8, 4 }
  0x25   : > { %s213_s12 = scalar_lea.sflag (!%p207_p2), [#allocation4], %s851_s8  ;;  %s216_s13 = scalar_lea.vmem (!%p207_p2), [#allocation3], %s555_s11 }
  0x29   : > { %707 = dma.done.wait (%p808_p6), %s213_s12, 256  }
  0x2a   : > { %709 = vsyncadd (%p808_p6), %s213_s12, 4294967040  ;;  %v861_v0 = vld [vmem:[%s216_s13] sm:$0xff]  ;;  %v863_v1 = vld [vmem:[%s216_s13 + $0x8] sm:$0xff]  ;;  %vm270_vm0 = vcmask 1043456   ;;  %v730_v5 = vmov 256.0   ;;  %v264_v12 = vlaneseq  ;;  %vm267_vm2 = vcmask 31744  }
  0x2b   : > { %v246_v2 = vadd.f32 %v863_v1, %v861_v0  ;;  %v257_v3 = vmax.f32 %v861_v0, %v863_v1  ;;  %v260_v4 = vld [vmem:[%s937_s1] sm:$0xf]  ;;  %622 = vrcp.f32 %v730_v5  ;;  %vm319_vm3 = vcmask 1040384   ;;  %s731_s19 = smov 4   ;;  %s261_s24 = sld [smem:[#allocation2]] }
  0x2c   : > { %557 = vmatpush.msk.msra.mxu0 %vm270_vm0, %v260_v4  ;;  %v321_v6 = vld [vmem:[%s939_s3] sm:$0xf]  ;;  %v265_v15 = vand.u32 127, %v264_v12  ;;  %vm354_vm4 = vcmask 1041408   ;;  %vm350_vm5 = vcmask 15360   ;;  %v408_v28 = vshrl.u32 %v264_v12, 7 }
  0x2d   : > { %247 = vadd.xlane.f32.xlu0 %v246_v2  ;;  %560 = vmatpush.msk.msra.mxu1 %vm270_vm0, %v321_v6  ;;  %v349_v23 = vld [vmem:[%s940_s4] sm:$0x3]  ;;  %s571_s26 = sshll.u32 %s786_s2, 4  ;;  %vm445_vm14 = vcmask 1042432   ;;  %vm450_vm15 = vcmask 1044480   ;;  %s243_s2 = scalar_lea.vmem [#allocation6], %s555_s11 }
  0x2e   : > { %v314_v18 = vadd.s32 4, %v265_v15  ;;  %562 = vmatpush.msk.msra.mxu2 %vm354_vm4, %v349_v23  ;;  %620 = vset.pattern.permute.xlu1 %v408_v28  ;;  %s473_s9 = scalar_lea.hbm %s941_s5, %s571_s26  ;;  %s475_s10 = sshll.u32 %s243_s2, 4  ;;  %s476_s10 = int_to_ptr.vmem [resolvable:$true] %s475_s10 }
  0x2f   : > { %621 = vset.pattern.permute.xlu0 %v408_v28  ;;  %s477_s12 = sshll.u32 %s473_s9, 4  ;;  %s462_s11 = scalar_lea.sflag [#allocation5], %s851_s8  ;;  %s478_s12 = int_to_ptr.hbm [resolvable:$true] %s477_s12 }
  0x30   : > { %s676_s13 = sshra.s32 %s478_s12, 4  ;;  %s682_s16 = scalar_lea.hbm %s941_s5, 32  ;;  %s677_s13 = int_to_ptr.hbm [resolvable:$true] %s676_s13 }
  0x31   : > { %v623_v7 = vpop.eup %622  ;;  %v262_v43 = vstv %s261_s24  ;;  %s678_s14 = scalar_lea.hbm %s677_s13, 16  ;;  %p683_p0 = scmp.lt.s32.totalorder %s677_s13, %s941_s5 }
  0x32   : > { %v250_v8 = vmul.f32 256.0, %v623_v7  ;;  %vm254_vm1 = vweird.f32 %v623_v7  ;;  %p679_p6 = scmp.ne.s32.totalorder %s677_s13, %s678_s14  ;;  %p684_p1 = scmp.lt.s32.totalorder %s682_s16, %s678_s14 }
  0x34   : > { %v251_v9 = vsub.f32 1.0, %v250_v8  ;;  %p680_p9 = pnand %p679_p6, %p815_p11  ;;  %p685_p3 = por %p684_p1, %p683_p0 }
  0x35   : > { %258 = vmax.xlane.f32.xlu0 %v257_v3 }
  0x36   : > { %v252_v10 = vmul.f32 %v623_v7, %v251_v9  ;;  %p681_p13 = pneg %p680_p9 }
  0x38   : > { %v253_v11 = vadd.f32 %v623_v7, %v252_v10  ;;  %p686_p4 = pnand %p685_p3, %p681_p13 }
  0x3a   : > { %v255_v13 = vsel %vm254_vm1, %v623_v7, %v253_v11  ;;  %vm453_vm1 = vcmask 1045504  }
  0xa0   : > { %v248_v14 = vpop.xlane.xlu0 %247 }
  0xa1   : > { %v256_v16 = vmul.f32 %v255_v13, %v248_v14 }
  0xa3   : > { %v266_v17 = vperm.slane %v256_v16, %v265_v15  ;;  %v317_v20 = vperm.slane %v256_v16, %v314_v18 }
  0xa5   : > { %558 = vmatmul.msk.f32.vlgmr.msra.gmra.mxu0 %vm267_vm2, %v266_v17 }
  0xa8   : > { %v259_v19 = vpop.xlane.xlu0 %258 }
  0xa9   : > { %v315_v21 = vperm.slane %v259_v19, %v314_v18 }
  0xab   : > { %v320_v22 = vsel %vm319_vm3, %v315_v21, %v317_v20 }
  0xac   : > { %561 = vmatmul.msk.f32.vlgmr.msra.gmra.mxu1 %vm267_vm2, %v320_v22 }
 0x122   : > { %v291_v44 = vpop.f32.mrf.mxu0 }
 0x123   : > { %v292_v45 = vadd.f32 %v291_v44, %v262_v43 }
 0x125   : > { %v559_v46 = vmul.f32 -1.442695, %v292_v45 }
 0x129   : > { %v345_v24 = vpop.f32.mrf.mxu1 }
 0x12a   : > { %v348_v25 = vmax.f32 %v345_v24, 0.0 }
 0x12c   : > { %563 = vmatmul.msk.f32.vlgmr.msra.gmra.mxu2 %vm350_vm5, %v348_v25  ;;  %vm456_vm5 = vcmask 1046528  }
 0x1af   : > { %v375_v26 = vpop.f32.mrf.mxu2 }
 0x1b0   : > { %v379_v27 = vrot.slane %v375_v26, 1 }
 0x1b2   : > { %v381_v29 = vadd.f32 %v379_v27, %v375_v26 }
 0x1b4   : > { %v564_v30 = vmul.f32 -1.442695, %v381_v29 }
 0x1b6   : > { %624 = vpow2.f32 %v564_v30 }
 0x1bc   : > { %v625_v31 = vpop.eup %624 }
 0x1bd   : > { %v385_v32 = vadd.f32 1.0, %v625_v31 }
 0x1bf   : > { %626 = vrcp.f32 %v385_v32  ;;  %v397_v36 = vand.u32 2147483648, %v385_v32  ;;  %v395_v38 = vand.u32 2147483647, %v385_v32  ;;  %vm391_vm7 = vweird.f32 %v385_v32 }
 0x1c0   : > { %628 = vpow2.f32 %v559_v46 }
 0x1c1   : > { %v398_v40 = vor.u32 1.1754944e-38, %v397_v36  ;;  %vm396_vm9 = vcmp.eq.f32.partialorder %v395_v38, 8.507059e+37 }
 0x1c5   : > { %v627_v33 = vpop.eup %626 }
 0x1c6   : > { %v387_v34 = vmul.f32 %v627_v33, %v385_v32  ;;  %vm392_vm6 = vweird.f32 %v627_v33  ;;  %v629_v47 = vpop.eup %628 }
 0x1c7   : > { %vm393_vm8 = vmor %vm391_vm7, %vm392_vm6  ;;  %v297_v48 = vadd.f32 1.0, %v629_v47 }
 0x1c8   : > { %v388_v35 = vsub.f32 1.0, %v387_v34 }
 0x1c9   : > { %630 = vrcp.f32 %v297_v48  ;;  %v309_v54 = vand.u32 2147483648, %v297_v48  ;;  %vm303_vm11 = vweird.f32 %v297_v48  ;;  %v307_v55 = vand.u32 2147483647, %v297_v48 }
 0x1ca   : > { %v389_v37 = vmul.f32 %v627_v33, %v388_v35 }
 0x1cb   : > { %v310_v57 = vor.u32 1.1754944e-38, %v309_v54  ;;  %vm308_vm13 = vcmp.eq.f32.partialorder %v307_v55, 8.507059e+37 }
 0x1cc   : > { %v390_v39 = vadd.f32 %v627_v33, %v389_v37 }
 0x1ce   : > { %v394_v41 = vsel %vm393_vm8, %v627_v33, %v390_v39 }
 0x1cf   : > { %v399_v42 = vsel %vm396_vm9, %v398_v40, %v394_v41  ;;  %v631_v49 = vpop.eup %630 }
 0x1d0   : > { %402 = vrot.lane.b32.xlu1 %v399_v42, %s731_s19  ;;  %v299_v50 = vmul.f32 %v631_v49, %v297_v48  ;;  %vm304_vm10 = vweird.f32 %v631_v49 }
 0x1d1   : > { %vm305_vm12 = vmor %vm303_vm11, %vm304_vm10 }
 0x1d2   : > { %v300_v51 = vsub.f32 1.0, %v299_v50 }
 0x1d4   : > { %v301_v52 = vmul.f32 %v631_v49, %v300_v51 }
 0x1d6   : > { %v302_v53 = vadd.f32 %v631_v49, %v301_v52 }
 0x1d8   : > { %v306_v56 = vsel %vm305_vm12, %v631_v49, %v302_v53 }
 0x1d9   : > { %v311_v58 = vsel %vm308_vm13, %v310_v57, %v306_v56 }
 0x242   : > { %v403_v59 = vpop.permute.xlu1 %402 }
 0x243   : > { %v405_v60 = vsel %vm267_vm2, %v311_v58, %v403_v59 }
 0x244   : > { %v406_v61 = vperm.slane %v405_v60, 0 }
 0x246   : > { %411 = vperm.xlu1 %620, %v406_v61  }
 0x2b8   : > { %v412_v62 = vpop.permute.xlu1 %411 }
 0x2b9   : > { %v413_v63 = vmul.f32 %v412_v62, %v861_v0  ;;  %v414_v2 = vmul.f32 %v412_v62, %v863_v1 }
 0x2bb   : > { %v417_v3 = vrot.slane %v413_v63, 3  ;;  %v418_v4 = vrot.slane %v414_v2, 3  ;;  %v421_v5 = vrot.slane %v413_v63, 7  ;;  %v422_v6 = vrot.slane %v414_v2, 7 }
 0x2bc   : > { %v425_v7 = vrot.slane %v413_v63, 2  ;;  %v426_v8 = vrot.slane %v414_v2, 2  ;;  %v429_v0 = vrot.slane %v413_v63, 6  ;;  %v430_v1 = vrot.slane %v414_v2, 6 }
 0x2bd   : > { %v441_v9 = vsel %vm319_vm3, %v413_v63, %v417_v3  ;;  %v442_v10 = vsel %vm319_vm3, %v414_v2, %v418_v4  ;;  %v433_v13 = vrot.slane %v413_v63, 1  ;;  %v434_v14 = vrot.slane %v414_v2, 1 }
 0x2be   : > { %v443_v11 = vsel %vm354_vm4, %v441_v9, %v421_v5  ;;  %v444_v12 = vsel %vm354_vm4, %v442_v10, %v422_v6  ;;  %v437_v17 = vrot.slane %v413_v63, 5  ;;  %v438_v18 = vrot.slane %v414_v2, 5 }
 0x2bf   : > { %v446_v15 = vsel %vm445_vm14, %v443_v11, %v425_v7  ;;  %v447_v16 = vsel %vm445_vm14, %v444_v12, %v426_v8 }
 0x2c0   : > { %v448_v19 = vsel %vm270_vm0, %v446_v15, %v429_v0  ;;  %v449_v20 = vsel %vm270_vm0, %v447_v16, %v430_v1 }
 0x2c1   : > { %v451_v21 = vsel %vm450_vm15, %v448_v19, %v433_v13  ;;  %v452_v22 = vsel %vm450_vm15, %v449_v20, %v434_v14 }
 0x2c2   : > { %v454_v23 = vsel %vm453_vm1, %v451_v21, %v437_v17  ;;  %v455_v24 = vsel %vm453_vm1, %v452_v22, %v438_v18 }
 0x2c3   : > { %v457_v25 = vsel %vm456_vm5, %v454_v23, %v413_v63  ;;  %v458_v26 = vsel %vm456_vm5, %v455_v24, %v414_v2 }
 0x2c4   : > { %459 = vst [vmem:[%s243_s2] sm:$0xff] %v457_v25 }
 0x2c5   : > { %460 = vst [vmem:[%s243_s2 + $0x8] sm:$0xff] %v458_v26 }
 0x2c6   : > { %689 = shalt.err (!%p686_p4)
}
 0x2c7   : > { %574 = dma.vmem_to_hbm [thread:$0]  (%p815_p11), %s476_s10, 256, %s478_s12, %s462_s11  }
 0x2c8 PF: > { %s489_s8 = sand.u32 1, %s716_s20   ;;  %p947_p7 = scmp.ge.s32.totalorder %s728_s23, 2 }
 0x2c9   : > { %s490_s19 = scalar_lea.sflag [#allocation5], %s489_s8 }
 0x2ca   : > { %p581_p5 = pnand %p947_p7, %p819_p12 }
 0x2cc   : > { %p582_p8 = pneg %p581_p5 }
 0x2ce   : > { %711 = dma.done.wait (%p582_p8), %s490_s19, 256  }
 0x2cf   : > { %713 = vsyncadd (%p582_p8), %s490_s19, 4294967040  ;;  %p19_p10 = scmp.ge.s32.totalorder %s790_s25, 4   ;;  %s948_s20 = smov %s720_s21 }
 0x2d0   : > { %s949_s21 = smov %s724_s22  ;;  %s950_s22 = smov %s802_s28 }
 0x2d1   : > { %s951_s23 = smov %s790_s25  ;;  %21 = sbr.rel (!%p19_p10) target bundleno = 7 (0x7), region = 85 }
 0x2d6   :  { %496 = vsyncpa [#allocation4], 1 }
 0x2d7   :  { %498 = vsyncpa [#allocation4 + $0x1], 1 }
 0x2d8   :  { %499 = vsyncpa [#allocation5], 1 }
 0x2d9   :  { %501 = vsyncpa [#allocation5 + $0x1], 1 }

</bundles_post_ra>
